<compile_context>
chip_gen: v6e
topology: v6e:2x2x1
jax: 0.10.0
libtpu: 0.0.40
codegen_flags: <defaults>
</compile_context>

<pallas_src>
import jax
import jax.numpy as jnp
from jax.experimental import pallas as pl
from jax.experimental.pallas import tpu as pltpu


# Wide lane-dense candidates (all multiples of 128), widest first.
_LANE_CANDIDATES = (4096, 3072, 2048, 1536, 1024, 768, 512, 384, 256, 128)

# ~8 MiB per VMEM block buffer (in + out, each double-buffered => ~32 MiB).
_TARGET_BLOCK_BYTES = 8 * 1024 * 1024
_VMEM_LIMIT_BYTES = 48 * 1024 * 1024

# Minimum (even) grid step count for Pallas-sized inputs: enables pipelining
# and balances the two v7x TensorCores; no effect on v5e/v6e (1 TC).
_MIN_GRID_STEPS = 4

# Below this, plain XLA beats the fixed pallas_call / pipeline setup cost.
_MIN_PALLAS_BYTES = 512 * 1024


def _sublane_multiple(dtype) -> int:
    # Sub-32-bit dtypes pack along sublanes: 8 rows (32b), 16 (16b), 32 (8b).
    return {4: 8, 2: 16, 1: 32}.get(jnp.dtype(dtype).itemsize, 8)


def _make_mult_kernel(out_dtype, compute_dtype):
    def kernel(factor_ref, x_ref, o_ref):
        f = factor_ref[0, 0]                       # scalar from SMEM
        xv = x_ref[...].astype(compute_dtype)      # f32 opmath for fp16/bf16
        o_ref[...] = (xv * f).astype(out_dtype)
    return kernel


def _choose_tile_rows(rows, lane, in_dtype, out_dtype):
    """Balanced tile height: >= _MIN_GRID_STEPS even steps, <= ~8 MiB/block."""
    sub = max(_sublane_multiple(in_dtype), _sublane_multiple(out_dtype))
    bpe = max(jnp.dtype(in_dtype).itemsize, jnp.dtype(out_dtype).itemsize)
    max_rows = max(sub, (_TARGET_BLOCK_BYTES // (lane * bpe)) // sub * sub)

    steps = max(_MIN_GRID_STEPS, pl.cdiv(rows, max_rows))
    steps = ((steps + 1) // 2) * 2                 # even (v7x: 2 TCs/chip)
    tile_rows = pl.cdiv(pl.cdiv(rows, steps), sub) * sub
    tile_rows = min(tile_rows, max_rows)
    if tile_rows >= rows:
        # Tiny (forced) inputs: a single full-extent block is always legal.
        return rows
    return tile_rows


def _mult_2d(x2d, factor_arr, out_dtype, compute_dtype, *, donate=False):
    rows, lane = x2d.shape
    tile_rows = _choose_tile_rows(rows, lane, x2d.dtype, out_dtype)
    grid = (pl.cdiv(rows, tile_rows),)

    io_aliases = {}
    if donate and jnp.dtype(out_dtype) == jnp.dtype(x2d.dtype):
        # NOTE: only avoids the copy if the caller also donates x at the
        # jax.jit boundary (donate_argnums); HBM read+write traffic is the
        # same either way.
        io_aliases = {1: 0}

    kernel = _make_mult_kernel(out_dtype, compute_dtype)

    return pl.pallas_call(
        kernel,
        out_shape=jax.ShapeDtypeStruct((rows, lane), out_dtype),
        grid_spec=pl.GridSpec(
            grid=grid,
            in_specs=[
                pl.BlockSpec(memory_space=pltpu.MemorySpace.SMEM),  # factor
                pl.BlockSpec((tile_rows, lane), lambda i: (i, 0)),  # x tile
            ],
            out_specs=pl.BlockSpec((tile_rows, lane), lambda i: (i, 0)),
        ),
        compiler_params=pltpu.CompilerParams(
            dimension_semantics=("parallel",),
            vmem_limit_bytes=_VMEM_LIMIT_BYTES,
        ),
        input_output_aliases=io_aliases,
    )(factor_arr, x2d)


def mult_layer(x, factor, *, donate: bool = False,
               min_pallas_bytes: int = _MIN_PALLAS_BYTES) -> jnp.ndarray:
    """Pallas equivalent of MultLayer.forward: returns x * factor."""
    x = jnp.asarray(x)

    # PyTorch-like promotion (python scalars stay weakly typed).
    if isinstance(factor, (bool, int, float)):
        out_dtype = jnp.result_type(x.dtype, factor)
    else:
        out_dtype = jnp.result_type(x, factor)
    if jnp.dtype(out_dtype) == jnp.dtype(jnp.float64):   # TPU: no native f64
        out_dtype = jnp.dtype(jnp.float32)

    # f32 opmath for all float outputs (covers bf16/fp16 upcast like PyTorch),
    # the output dtype itself for integers.
    if jnp.issubdtype(jnp.dtype(out_dtype), jnp.floating):
        compute_dtype = jnp.dtype(jnp.float32)
    else:
        compute_dtype = jnp.dtype(out_dtype)

    orig_shape = x.shape
    n = x.size
    if n == 0:
        return jnp.zeros(orig_shape, out_dtype)

    factor_val = jnp.asarray(factor, compute_dtype)

    # Small-tensor escape hatch.
    bpe = max(jnp.dtype(x.dtype).itemsize, jnp.dtype(out_dtype).itemsize)
    if n * bpe < min_pallas_bytes:
        return (x.astype(compute_dtype) * factor_val).astype(out_dtype)

    factor_arr = factor_val.reshape(1, 1)
    flat = x.reshape(-1)

    # Fast path: numel divides a wide multiple of 128 -> reshape in place to a
    # lane-dense slab, no pad/slice copies.
    lane = next((c for c in _LANE_CANDIDATES if n % c == 0), None)
    if lane is not None:
        out2d = _mult_2d(flat.reshape(n // lane, lane), factor_arr,
                         out_dtype, compute_dtype, donate=donate)
        return out2d.reshape(orig_shape)

    # Ragged path (numel % 128 != 0): kernel handles the 128-aligned prefix,
    # XLA handles the <128-element tail.
    # TODO(synk): mask the final block inside the kernel to also avoid the
    # prefix-slice / concatenate copies.
    n_aligned = (n // 128) * 128
    tail = (flat[n_aligned:].astype(compute_dtype) * factor_val).astype(out_dtype)
    if n_aligned == 0:
        return tail.reshape(orig_shape)
    lane = next(c for c in _LANE_CANDIDATES if n_aligned % c == 0)
    prefix2d = flat[:n_aligned].reshape(n_aligned // lane, lane)
    prefix = _mult_2d(prefix2d, factor_arr, out_dtype, compute_dtype,
                      donate=False).reshape(-1)
    return jnp.concatenate([prefix, tail]).reshape(orig_shape)


if __name__ == "__main__":
    factor = 2.5

    # 1) Module-shaped example (batch=2, channels=4, spatial=16x16). Tiny, so
    #    force the Pallas path (default would take the XLA escape hatch).
    x = jax.random.normal(jax.random.PRNGKey(0), (2, 4, 16, 16), jnp.float32)
    out = jax.block_until_ready(mult_layer(x, factor, min_pallas_bytes=0))
    expected = x * factor
    assert out.shape == expected.shape and out.dtype == expected.dtype
    assert jnp.allclose(out, expected, atol=1e-6, rtol=1e-6)

    # 2) Large input: default path, lane=2048, balanced 4-step grid.
    x_big = jax.random.normal(jax.random.PRNGKey(1), (1030, 1024), jnp.float32)
    out_big = jax.block_until_ready(mult_layer(x_big, factor))
    assert jnp.allclose(out_big, x_big * factor, atol=1e-6, rtol=1e-6)

    # 3) bf16 input with a traced bf16 factor (f32 opmath, cast back).
    x_bf = x.astype(jnp.bfloat16)
    out_bf = jax.block_until_ready(
        mult_layer(x_bf, jnp.bfloat16(factor), min_pallas_bytes=0))
    ref_bf = (x_bf.astype(jnp.float32) * factor).astype(jnp.bfloat16)
    assert out_bf.dtype == jnp.bfloat16
    assert jnp.allclose(out_bf.astype(jnp.float32), ref_bf.astype(jnp.float32))

    # 4) Ragged size (numel % 128 != 0): Pallas prefix + XLA tail.
    x_rag = jax.random.normal(jax.random.PRNGKey(2), (257, 515), jnp.float32)
    out_rag = jax.block_until_ready(mult_layer(x_rag, factor, min_pallas_bytes=0))
    assert jnp.allclose(out_rag, x_rag * factor, atol=1e-6, rtol=1e-6)

    print("KERNEL_OK")
</pallas_src>

<mosaic_0001>
module attributes {stable_mosaic.version = 11 : i64} {
  func.func @kernel(%arg0: i32, %arg1: memref<1x1xf32, #tpu.memory_space<smem>>, %arg2: memref<1x2048xf32, #tpu.memory_space<vmem>>, %arg3: memref<1x2048xf32, #tpu.memory_space<vmem>>) attributes {dimension_semantics = [#tpu.dimension_semantics<parallel>], iteration_bounds = array<i64: 1>, scalar_prefetch = 0 : i64, scratch_operands = 0 : i64, tpu.core_type = #tpu.core_type<tc>, window_params = [{transform_indices = @transform_0, window_bounds = array<i64: 1, 1>}, {transform_indices = @transform_1, window_bounds = array<i64: 1, 2048>}, {transform_indices = @transform_2, window_bounds = array<i64: 1, 2048>}]} {
    %c0 = arith.constant 0 : index
    %c0_0 = arith.constant 0 : index
    %0 = memref.load %arg1[%c0, %c0_0] : memref<1x1xf32, #tpu.memory_space<smem>>
    %c0_1 = arith.constant 0 : index
    %c0_2 = arith.constant 0 : index
    %1 = vector.load %arg2[%c0_1, %c0_2] : memref<1x2048xf32, #tpu.memory_space<vmem>>, vector<1x2048xf32>
    %2 = vector.broadcast %0 : f32 to vector<1x2048xf32>
    %3 = arith.mulf %1, %2 : vector<1x2048xf32>
    %c0_3 = arith.constant 0 : index
    %c0_4 = arith.constant 0 : index
    %4 = vector.load %arg3[%c0_3, %c0_4] : memref<1x2048xf32, #tpu.memory_space<vmem>>, vector<1x2048xf32>
    tpu.vector_store %arg3[%c0_3, %c0_4], %3 {strides = array<i32>} : memref<1x2048xf32, #tpu.memory_space<vmem>>, vector<1x2048xf32>,
    return
  }
  func.func @transform_0(%arg0: i32) -> (i32, i32) {
    %c0_i32 = arith.constant 0 : i32
    %c0_i32_0 = arith.constant 0 : i32
    %c0_i32_1 = arith.constant 0 : i32
    return %c0_i32, %c0_i32_0 : i32, i32
  }
  func.func @transform_1(%arg0: i32) -> (i32, i32) {
    %c0_i32 = arith.constant 0 : i32
    %c0_i32_0 = arith.constant 0 : i32
    return %arg0, %c0_i32 : i32, i32
  }
  func.func @transform_2(%arg0: i32) -> (i32, i32) {
    %c0_i32 = arith.constant 0 : i32
    %c0_i32_0 = arith.constant 0 : i32
    return %arg0, %c0_i32 : i32, i32
  }
}

</mosaic_0001>

<bundles_post_ra>
// kernel: tpu_custom_call.1
= control target key start
LH: loop header
LB: loop body
LE: loop exit
PB: predicated region body
PF: predicated region fallthrough
CT: control target
= control target key end

     0   :  { %8 = vsyncpa [#allocation4], 0  ;;  %s120_s0 = inlined_call_operand.<no memory space> [shape: f32[1,1], index: 0, kind: input, shape index: {}]   ;;  %s121_s1 = inlined_call_operand.hbm [shape: f32[1,2048], index: 1, kind: input, shape index: {}]   ;;  %s122_s2 = inlined_call_operand.hbm [shape: f32[1,2048], index: 2, kind: output, shape index: {}]  }
   0x1   :  { %9 = vsyncpa [#allocation5], 0  ;;  %s94_s9 = smov [#allocation3]  }
   0x2   :  { %s18_s10 = sshll.u32 %s94_s9, 4  ;;  %s19_s10 = int_to_ptr.vmem [resolvable:$true] %s18_s10 }
   0x3   :  { %s58_s11 = scalar_lea.vmem %s19_s10, 256  ;;  %p63_p1 = scmp.lt.s32.totalorder %s19_s10, %s19_s10 }
   0x4   :  { %p59_p0 = scmp.ne.s32.totalorder %s19_s10, %s58_s11  ;;  %p64_p2 = scmp.lt.s32.totalorder %s58_s11, %s58_s11 }
   0x6   :  { %p65_p3 = por %p64_p2, %p63_p1 }
   0x8   :  { %p66_p4 = pnand %p65_p3, %p59_p0 }
   0xa   :  { %69 = shalt.err (!%p66_p4)
}
   0xb   :  { %21 = dma.hbm_to_vmem [thread:$0]  %s121_s1, 256, %s19_s10, [#allocation4]  }
   0xc   :  { %90 = dma.done.wait [#allocation4], 256  }
   0xd   :  { %91 = vsyncadd [#allocation4], 4294967040  ;;  %v28_v0 = vstv %s120_s0  ;;  %s95_s16 = smov [#allocation6]   ;;  %v26_v1 = vld [vmem:[#allocation3] sm:$0xff]  ;;  %v27_v2 = vld [vmem:[#allocation3 + $0x8] sm:$0xff] }
   0xe   :  { %s39_s17 = sshll.u32 %s95_s16, 4  ;;  %v29_v3 = vmul.f32 %v28_v0, %v26_v1  ;;  %v30_v4 = vmul.f32 %v28_v0, %v27_v2  ;;  %s40_s17 = int_to_ptr.vmem [resolvable:$true] %s39_s17 }
   0xf   :  { %s70_s18 = scalar_lea.vmem %s40_s17, 256  ;;  %p75_p6 = scmp.lt.s32.totalorder %s40_s17, %s40_s17 }
  0x10   :  { %31 = vst [vmem:[#allocation6] sm:$0xff] %v29_v3  ;;  %32 = vst [vmem:[#allocation6 + $0x8] sm:$0xff] %v30_v4  ;;  %p71_p5 = scmp.ne.s32.totalorder %s40_s17, %s70_s18  ;;  %p76_p7 = scmp.lt.s32.totalorder %s70_s18, %s70_s18 }
  0x12   :  { %p77_p8 = por %p76_p7, %p75_p6 }
  0x14   :  { %p78_p9 = pnand %p77_p8, %p71_p5 }
  0x16   :  { %81 = shalt.err (!%p78_p9)
}
  0x17   :  { %42 = dma.vmem_to_hbm [thread:$0]  %s40_s17, 256, %s122_s2, [#allocation5]  }
  0x18   :  { %92 = dma.done.wait [#allocation5], 256  }
  0x19   :  { %93 = vsyncadd [#allocation5], 4294967040 }
  0x1a   :  { %46 = vsyncpa [#allocation4], 1 }
  0x1b   :  { %47 = vsyncpa [#allocation5], 1 }

</bundles_post_ra>
